<compile_context>
chip_gen: v7x
topology: tpu7x:2x2x1
jax: 0.10.0
libtpu: 0.0.40
codegen_flags: <defaults>
</compile_context>

<pallas_src>
import jax
import jax.numpy as jnp
from jax import lax
from jax.experimental import pallas as pl
from jax.experimental.pallas import tpu as pltpu


def make_banded_weights(w_hwio, W):
    """Fold the kx taps, input channels and the W-boundary zero padding of a
    3x3 'SAME' conv into a K-stacked (3*W*C, W*C) banded matrix.

    Block ky of the stacked matrix satisfies
        A[ky][w_in*C + ci, w_out*C + co] = w_hwio[ky, kx, ci, co]
    with kx = w_in - w_out + 1 when 0 <= kx <= 2, else 0, so that
        out_row[h] = sum_ky x_hpad_row[h + ky] @ A[ky]
    which the kernel realizes as a single K=3*W*C matmul.
    """
    _, _, C, _ = w_hwio.shape
    w_in = jnp.arange(W)[:, None]
    w_out = jnp.arange(W)[None, :]
    kx = w_in - w_out + 1                                     # (W, W)
    valid = ((kx >= 0) & (kx <= 2)).astype(w_hwio.dtype)
    kx_c = jnp.clip(kx, 0, 2)
    slabs = []
    for ky in range(3):
        blocks = w_hwio[ky][kx_c] * valid[:, :, None, None]   # (W, W, C, C)
        slabs.append(blocks.transpose(0, 2, 1, 3).reshape(W * C, W * C))
    return jnp.concatenate(slabs, axis=0)                     # (3*W*C, W*C)


def make_residual_block_kernel(hp):
    """hp = H + 2 (rows per padded sample); needed for static halo indices."""

    def kernel(xp_ref, ab_ref, sb_ref, out_ref, hpad_ref):
        # xp_ref  : (Mb, WC)        Mb = NB*(H+2) H-zero-padded, lane-packed rows
        # ab_ref  : (2, 3*WC, WC)   K-stacked banded weight slabs (conv1, conv2)
        # sb_ref  : (4, WC)         rows: s1, b1, s2, b2 (BN+bias folded, W-tiled)
        # out_ref : (Mb, WC)        lane-dense output slab (halo rows zeroed)
        # hpad_ref: (Mb, WC)        scratch for the padded intermediate
        mb, wc = hpad_ref.shape
        m2 = mb - 2                        # number of conv-output rows computed

        s1 = sb_ref[0:1, :]
        b1 = sb_ref[1:2, :]
        s2 = sb_ref[2:3, :]
        b2 = sb_ref[3:4, :]

        xp = xp_ref[...]                   # (Mb, WC): a few dense vregs

        # ---- conv1: one K=3*WC MXU matmul over row-shifted, lane-concat LHS ----
        lhs1 = jnp.concatenate(
            [xp[0:m2, :], xp[1:m2 + 1, :], xp[2:m2 + 2, :]], axis=-1)
        acc1 = jnp.dot(lhs1, ab_ref[0], preferred_element_type=jnp.float32)
        h = jnp.maximum(acc1 * s1 + b1, 0.0)          # BN1 + ReLU, rows p=1..mb-2

        # ---- stash intermediate in padded scratch; zero all halo rows ----
        zrow = jnp.zeros((1, wc), jnp.float32)
        hpad_ref[1:mb - 1, :] = h
        for p in range(0, mb, hp):                    # top halo of each sample
            hpad_ref[p:p + 1, :] = zrow
        for p in range(hp - 1, mb, hp):               # bottom halo of each sample
            hpad_ref[p:p + 1, :] = zrow

        # ---- conv2: same K-fused banded formulation ----
        lhs2 = jnp.concatenate(
            [hpad_ref[0:m2, :], hpad_ref[1:m2 + 1, :], hpad_ref[2:m2 + 2, :]],
            axis=-1)
        acc2 = jnp.dot(lhs2, ab_ref[1], preferred_element_type=jnp.float32)
        o = acc2 * s2 + b2                            # BN2

        # ---- residual add + ReLU, lane-dense store ----
        res = xp[1:mb - 1, :]
        out = jnp.maximum(o + res, 0.0)
        out_ref[0:1, :] = zrow
        out_ref[mb - 1:mb, :] = zrow
        out_ref[1:mb - 1, :] = out.astype(out_ref.dtype)

    return kernel


def residual_block_pallas(x_nchw, w1_hwio, s1, b1, w2_hwio, s2, b2, *, nb=None):
    """x_nchw: (N, C, H, W) float32. Returns (N, C, H, W) float32."""
    x = jnp.transpose(x_nchw, (0, 2, 3, 1)).astype(jnp.float32)   # NHWC
    N, H, W, C = x.shape
    WC = W * C
    assert WC % 128 == 0, "lane-packed layout requires W*C to be a multiple of 128"

    Hp = H + 2
    NB = N if nb is None else nb          # samples folded into M per grid step
    assert N % NB == 0
    Mb = NB * Hp
    G = N // NB
    # (8,128) tiling: a partial block along the row axis needs 8-alignment.
    assert G == 1 or Mb % 8 == 0, "pick NB so NB*(H+2) is a multiple of 8 when grid > 1"

    # Lane-packed, H-zero-padded rows for the whole batch: (N*(H+2), W*C).
    # (W padding is folded into the banded weights.)
    xp = jnp.pad(x.reshape(N, H, WC), ((0, 0), (1, 1), (0, 0))).reshape(N * Hp, WC)

    # K-stacked banded weights for both convs, merged into one input.
    a1 = make_banded_weights(w1_hwio.astype(jnp.float32), W)      # (3*WC, WC)
    a2 = make_banded_weights(w2_hwio.astype(jnp.float32), W)
    ab = jnp.stack([a1, a2], axis=0)                              # (2, 3*WC, WC)

    # Folded BN(+conv-bias) scale/bias, W-tiled and merged into one input.
    sb = jnp.stack([jnp.tile(s1, W), jnp.tile(b1, W),
                    jnp.tile(s2, W), jnp.tile(b2, W)],
                   axis=0).astype(jnp.float32)                    # (4, WC)

    kernel = make_residual_block_kernel(Hp)

    out = pl.pallas_call(
        kernel,
        out_shape=jax.ShapeDtypeStruct((N * Hp, WC), jnp.float32),
        grid_spec=pltpu.PrefetchScalarGridSpec(
            num_scalar_prefetch=0,
            grid=(G,),
            in_specs=[
                pl.BlockSpec((Mb, WC), lambda g: (g, 0)),
                pl.BlockSpec((2, 3 * WC, WC), lambda g: (0, 0, 0)),
                pl.BlockSpec((4, WC), lambda g: (0, 0)),
            ],
            out_specs=pl.BlockSpec((Mb, WC), lambda g: (g, 0)),
            scratch_shapes=[pltpu.VMEM((Mb, WC), jnp.float32)],
        ),
        compiler_params=pltpu.CompilerParams(
            dimension_semantics=("parallel",),
            vmem_limit_bytes=32 * 1024 * 1024),
    )(xp, ab, sb)

    # Drop per-sample halo rows and unpack the lane-dense slab back to NCHW.
    out = out.reshape(N, Hp, WC)[:, 1:H + 1, :].reshape(N, H, W, C)
    return jnp.transpose(out, (0, 3, 1, 2))


def residual_block_reference(x_nchw, w1_hwio, s1, b1, w2_hwio, s2, b2):
    """Pure-JAX reference (lax.conv) for correctness checking."""
    x = jnp.transpose(x_nchw, (0, 2, 3, 1)).astype(jnp.float32)
    dn = lax.conv_dimension_numbers(x.shape, w1_hwio.shape,
                                    ('NHWC', 'HWIO', 'NHWC'))
    h = lax.conv_general_dilated(x, w1_hwio, (1, 1), 'SAME',
                                 dimension_numbers=dn)
    h = jnp.maximum(h * s1 + b1, 0.0)
    o = lax.conv_general_dilated(h, w2_hwio, (1, 1), 'SAME',
                                 dimension_numbers=dn)
    o = o * s2 + b2
    o = jnp.maximum(o + x, 0.0)
    return jnp.transpose(o, (0, 3, 1, 2))


def make_params(key, channels):
    """Deterministic Conv2d + BatchNorm2d parameters; BN folded to scale/bias."""
    C = channels
    eps = 1e-5
    k = jax.random.split(key, 8)
    # PyTorch Conv2d weights are (C_out, C_in, 3, 3); convert to HWIO.
    w1_oihw = 0.1 * jax.random.normal(k[0], (C, C, 3, 3), jnp.float32)
    w2_oihw = 0.1 * jax.random.normal(k[1], (C, C, 3, 3), jnp.float32)
    w1_hwio = jnp.transpose(w1_oihw, (2, 3, 1, 0))
    w2_hwio = jnp.transpose(w2_oihw, (2, 3, 1, 0))
    cb1 = 0.05 * jax.random.normal(k[2], (C,), jnp.float32)
    cb2 = 0.05 * jax.random.normal(k[3], (C,), jnp.float32)
    g1 = jax.random.uniform(k[4], (C,), jnp.float32, 0.5, 1.5)
    g2 = jax.random.uniform(k[5], (C,), jnp.float32, 0.5, 1.5)
    be1 = 0.1 * jax.random.normal(k[6], (C,), jnp.float32)
    be2 = 0.1 * jax.random.normal(k[7], (C,), jnp.float32)
    rm = jnp.zeros((C,), jnp.float32)   # running_mean init
    rv = jnp.ones((C,), jnp.float32)    # running_var init
    s1 = g1 / jnp.sqrt(rv + eps)
    b1 = be1 + (cb1 - rm) * s1
    s2 = g2 / jnp.sqrt(rv + eps)
    b2 = be2 + (cb2 - rm) * s2
    return w1_hwio, s1, b1, w2_hwio, s2, b2


if __name__ == "__main__":
    key = jax.random.PRNGKey(0)
    kx, kp = jax.random.split(key)

    N, C, H, W = 2, 8, 16, 16
    x = jax.random.normal(kx, (N, C, H, W), jnp.float32)  # NCHW like PyTorch
    params = make_params(kp, C)

    out = residual_block_pallas(x, *params)
    out = jax.block_until_ready(out)

    ref = residual_block_reference(x, *params)
    assert out.shape == (N, C, H, W)
    assert jnp.allclose(out, ref, atol=1e-4, rtol=1e-4), (
        f"max abs err {jnp.max(jnp.abs(out - ref))}")

    print("KERNEL_OK")
</pallas_src>

<mosaic_0001>
module attributes {stable_mosaic.version = 11 : i64} {
  func.func @kernel(%arg0: i32, %arg1: memref<36x128xf32, #tpu.memory_space<vmem>>, %arg2: memref<2x384x128xf32, #tpu.memory_space<vmem>>, %arg3: memref<4x128xf32, #tpu.memory_space<vmem>>, %arg4: memref<36x128xf32, #tpu.memory_space<vmem>>, %arg5: memref<36x128xf32, #tpu.memory_space<vmem>>) attributes {dimension_semantics = [#tpu.dimension_semantics<parallel>], iteration_bounds = array<i64: 1>, scalar_prefetch = 0 : i64, scratch_operands = 1 : i64, tpu.core_type = #tpu.core_type<tc>, window_params = [{transform_indices = @transform_0, window_bounds = array<i64: 36, 128>}, {pipeline_mode = #tpu.pipeline_mode<synchronous>, transform_indices = @transform_1, window_bounds = array<i64: 2, 384, 128>}, {pipeline_mode = #tpu.pipeline_mode<synchronous>, transform_indices = @transform_2, window_bounds = array<i64: 4, 128>}, {transform_indices = @transform_3, window_bounds = array<i64: 36, 128>}]} {
    %c0 = arith.constant 0 : index
    %c0_0 = arith.constant 0 : index
    %0 = vector.load %arg3[%c0, %c0_0] : memref<4x128xf32, #tpu.memory_space<vmem>>, vector<1x128xf32>
    %c1 = arith.constant 1 : index
    %c0_1 = arith.constant 0 : index
    %1 = vector.load %arg3[%c1, %c0_1] : memref<4x128xf32, #tpu.memory_space<vmem>>, vector<1x128xf32>
    %c2 = arith.constant 2 : index
    %c0_2 = arith.constant 0 : index
    %2 = vector.load %arg3[%c2, %c0_2] : memref<4x128xf32, #tpu.memory_space<vmem>>, vector<1x128xf32>
    %c3 = arith.constant 3 : index
    %c0_3 = arith.constant 0 : index
    %3 = vector.load %arg3[%c3, %c0_3] : memref<4x128xf32, #tpu.memory_space<vmem>>, vector<1x128xf32>
    %c0_4 = arith.constant 0 : index
    %c0_5 = arith.constant 0 : index
    %4 = vector.load %arg1[%c0_4, %c0_5] : memref<36x128xf32, #tpu.memory_space<vmem>>, vector<36x128xf32>
    %5 = vector.extract_strided_slice %4 {offsets = [0, 0], sizes = [34, 128], strides = [1, 1]} : vector<36x128xf32> to vector<34x128xf32>
    %6 = vector.extract_strided_slice %4 {offsets = [1, 0], sizes = [34, 128], strides = [1, 1]} : vector<36x128xf32> to vector<34x128xf32>
    %7 = vector.extract_strided_slice %4 {offsets = [2, 0], sizes = [34, 128], strides = [1, 1]} : vector<36x128xf32> to vector<34x128xf32>
    %8 = tpu.concatenate %5, %6, %7 in 1 : vector<34x128xf32>, vector<34x128xf32>, vector<34x128xf32> -> vector<34x384xf32>
    %c0_6 = arith.constant 0 : index
    %c0_7 = arith.constant 0 : index
    %c0_8 = arith.constant 0 : index
    %9 = vector.load %arg2[%c0_6, %c0_7, %c0_8] : memref<2x384x128xf32, #tpu.memory_space<vmem>>, vector<1x384x128xf32>
    %10 = vector.shape_cast %9 : vector<1x384x128xf32> to vector<384x128xf32>
    %cst = arith.constant dense<0.000000e+00> : vector<34x128xf32>
    %11 = tpu.matmul %8, %10, %cst {dimension_numbers = #tpu.dot_dimension_numbers<[1], [0], [0], [1], [0, 0, 1, 1], [], []>} : vector<34x384xf32>, vector<384x128xf32>, vector<34x128xf32> -> vector<34x128xf32>
    %12 = vector.broadcast %0 : vector<1x128xf32> to vector<34x128xf32>
    %13 = arith.mulf %11, %12 : vector<34x128xf32>
    %14 = vector.broadcast %1 : vector<1x128xf32> to vector<34x128xf32>
    %15 = arith.addf %13, %14 : vector<34x128xf32>
    %cst_9 = arith.constant 0.000000e+00 : f32
    %16 = vector.broadcast %cst_9 : f32 to vector<34x128xf32>
    %17 = arith.maximumf %15, %16 : vector<34x128xf32>
    %cst_10 = arith.constant 0.000000e+00 : f32
    %18 = vector.broadcast %cst_10 : f32 to vector<1x128xf32>
    %c1_11 = arith.constant 1 : index
    %c0_12 = arith.constant 0 : index
    %19 = vector.load %arg5[%c1_11, %c0_12] : memref<36x128xf32, #tpu.memory_space<vmem>>, vector<34x128xf32>
    tpu.vector_store %arg5[%c1_11, %c0_12], %17 {strides = array<i32>} : memref<36x128xf32, #tpu.memory_space<vmem>>, vector<34x128xf32>,
    %c0_13 = arith.constant 0 : index
    %c0_14 = arith.constant 0 : index
    %20 = vector.load %arg5[%c0_13, %c0_14] : memref<36x128xf32, #tpu.memory_space<vmem>>, vector<1x128xf32>
    tpu.vector_store %arg5[%c0_13, %c0_14], %18 {strides = array<i32>} : memref<36x128xf32, #tpu.memory_space<vmem>>, vector<1x128xf32>,
    %c18 = arith.constant 18 : index
    %c0_15 = arith.constant 0 : index
    %21 = vector.load %arg5[%c18, %c0_15] : memref<36x128xf32, #tpu.memory_space<vmem>>, vector<1x128xf32>
    tpu.vector_store %arg5[%c18, %c0_15], %18 {strides = array<i32>} : memref<36x128xf32, #tpu.memory_space<vmem>>, vector<1x128xf32>,
    %c17 = arith.constant 17 : index
    %c0_16 = arith.constant 0 : index
    %22 = vector.load %arg5[%c17, %c0_16] : memref<36x128xf32, #tpu.memory_space<vmem>>, vector<1x128xf32>
    tpu.vector_store %arg5[%c17, %c0_16], %18 {strides = array<i32>} : memref<36x128xf32, #tpu.memory_space<vmem>>, vector<1x128xf32>,
    %c35 = arith.constant 35 : index
    %c0_17 = arith.constant 0 : index
    %23 = vector.load %arg5[%c35, %c0_17] : memref<36x128xf32, #tpu.memory_space<vmem>>, vector<1x128xf32>
    tpu.vector_store %arg5[%c35, %c0_17], %18 {strides = array<i32>} : memref<36x128xf32, #tpu.memory_space<vmem>>, vector<1x128xf32>,
    %c0_18 = arith.constant 0 : index
    %c0_19 = arith.constant 0 : index
    %24 = vector.load %arg5[%c0_18, %c0_19] : memref<36x128xf32, #tpu.memory_space<vmem>>, vector<34x128xf32>
    %c1_20 = arith.constant 1 : index
    %c0_21 = arith.constant 0 : index
    %25 = vector.load %arg5[%c1_20, %c0_21] : memref<36x128xf32, #tpu.memory_space<vmem>>, vector<34x128xf32>
    %c2_22 = arith.constant 2 : index
    %c0_23 = arith.constant 0 : index
    %26 = vector.load %arg5[%c2_22, %c0_23] : memref<36x128xf32, #tpu.memory_space<vmem>>, vector<34x128xf32>
    %27 = tpu.concatenate %24, %25, %26 in 1 : vector<34x128xf32>, vector<34x128xf32>, vector<34x128xf32> -> vector<34x384xf32>
    %c1_24 = arith.constant 1 : index
    %c0_25 = arith.constant 0 : index
    %c0_26 = arith.constant 0 : index
    %28 = vector.load %arg2[%c1_24, %c0_25, %c0_26] : memref<2x384x128xf32, #tpu.memory_space<vmem>>, vector<1x384x128xf32>
    %29 = vector.shape_cast %28 : vector<1x384x128xf32> to vector<384x128xf32>
    %cst_27 = arith.constant dense<0.000000e+00> : vector<34x128xf32>
    %30 = tpu.matmul %27, %29, %cst_27 {dimension_numbers = #tpu.dot_dimension_numbers<[1], [0], [0], [1], [0, 0, 1, 1], [], []>} : vector<34x384xf32>, vector<384x128xf32>, vector<34x128xf32> -> vector<34x128xf32>
    %31 = vector.broadcast %2 : vector<1x128xf32> to vector<34x128xf32>
    %32 = arith.mulf %30, %31 : vector<34x128xf32>
    %33 = vector.broadcast %3 : vector<1x128xf32> to vector<34x128xf32>
    %34 = arith.addf %32, %33 : vector<34x128xf32>
    %35 = vector.extract_strided_slice %4 {offsets = [1, 0], sizes = [34, 128], strides = [1, 1]} : vector<36x128xf32> to vector<34x128xf32>
    %36 = arith.addf %34, %35 : vector<34x128xf32>
    %cst_28 = arith.constant 0.000000e+00 : f32
    %37 = vector.broadcast %cst_28 : f32 to vector<34x128xf32>
    %38 = arith.maximumf %36, %37 : vector<34x128xf32>
    %c0_29 = arith.constant 0 : index
    %c0_30 = arith.constant 0 : index
    %39 = vector.load %arg4[%c0_29, %c0_30] : memref<36x128xf32, #tpu.memory_space<vmem>>, vector<1x128xf32>
    tpu.vector_store %arg4[%c0_29, %c0_30], %18 {strides = array<i32>} : memref<36x128xf32, #tpu.memory_space<vmem>>, vector<1x128xf32>,
    %c35_31 = arith.constant 35 : index
    %c0_32 = arith.constant 0 : index
    %40 = vector.load %arg4[%c35_31, %c0_32] : memref<36x128xf32, #tpu.memory_space<vmem>>, vector<1x128xf32>
    tpu.vector_store %arg4[%c35_31, %c0_32], %18 {strides = array<i32>} : memref<36x128xf32, #tpu.memory_space<vmem>>, vector<1x128xf32>,
    %c1_33 = arith.constant 1 : index
    %c0_34 = arith.constant 0 : index
    %41 = vector.load %arg4[%c1_33, %c0_34] : memref<36x128xf32, #tpu.memory_space<vmem>>, vector<34x128xf32>
    tpu.vector_store %arg4[%c1_33, %c0_34], %38 {strides = array<i32>} : memref<36x128xf32, #tpu.memory_space<vmem>>, vector<34x128xf32>,
    return
  }
  func.func @transform_0(%arg0: i32) -> (i32, i32) {
    %c0_i32 = arith.constant 0 : i32
    %c0_i32_0 = arith.constant 0 : i32
    return %arg0, %c0_i32 : i32, i32
  }
  func.func @transform_1(%arg0: i32) -> (i32, i32, i32) {
    %c0_i32 = arith.constant 0 : i32
    %c0_i32_0 = arith.constant 0 : i32
    %c0_i32_1 = arith.constant 0 : i32
    %c0_i32_2 = arith.constant 0 : i32
    return %c0_i32, %c0_i32_0, %c0_i32_1 : i32, i32, i32
  }
  func.func @transform_2(%arg0: i32) -> (i32, i32) {
    %c0_i32 = arith.constant 0 : i32
    %c0_i32_0 = arith.constant 0 : i32
    %c0_i32_1 = arith.constant 0 : i32
    return %c0_i32, %c0_i32_0 : i32, i32
  }
  func.func @transform_3(%arg0: i32) -> (i32, i32) {
    %c0_i32 = arith.constant 0 : i32
    %c0_i32_0 = arith.constant 0 : i32
    return %arg0, %c0_i32 : i32, i32
  }
}

</mosaic_0001>

<bundles_post_ra>
// kernel: tpu_custom_call.1
= control target key start
LH: loop header
LB: loop body
LE: loop exit
PB: predicated region body
PF: predicated region fallthrough
CT: control target
= control target key end

     0   :  { %8 = vsyncpa [#allocation4], 0  ;;  %s1241_s0 = inlined_call_operand.hbm [shape: f32[36,128], index: 0, kind: input, shape index: {}]   ;;  %s1242_s1 = inlined_call_operand.hbm [shape: f32[2,384,128], index: 1, kind: input, shape index: {}]   ;;  %s1243_s2 = inlined_call_operand.vmem [shape: f32[4,128], index: 2, kind: input, shape index: {}]   ;;  %s1244_s3 = inlined_call_operand.hbm [shape: f32[36,128], index: 3, kind: output, shape index: {}]  }
   0x1   :  { %9 = vsyncpa [#allocation7], 0 }
   0x2   :  { %10 = vsyncpa [#allocation5], 0  ;;  %s1070_s12 = smov [#allocation3]   ;;  %s998_s16 = scalar_lea.hbm %s1241_s0, 640 }
   0x3   :  { %s16_s13 = sshll.u32 %s1070_s12, 4  ;;  %p999_p0 = scmp.ne.s32.totalorder %s1241_s0, %s998_s16  ;;  %s17_s13 = int_to_ptr.vmem [resolvable:$true] %s16_s13 }
   0x4   :  { %p1002_p1 = scmp.lt.u32.totalorder %s998_s16, %s1241_s0 }
   0x6   :  { %p1004_p2 = pnand %p1002_p1, %p999_p0 }
   0x8   :  { %1007 = shalt.err (!%p1004_p2)
}
   0x9   :  { %s1008_s21 = scalar_lea.vmem %s17_s13, 640  ;;  %p1013_p4 = scmp.lt.s32.totalorder %s17_s13, %s17_s13 }
   0xa   :  { %p1009_p3 = scmp.ne.s32.totalorder %s17_s13, %s1008_s21  ;;  %p1014_p5 = scmp.lt.s32.totalorder %s1008_s21, %s1008_s21 }
   0xc   :  { %p1015_p6 = por %p1014_p5, %p1013_p4 }
   0xe   :  { %p1016_p7 = pnand %p1015_p6, %p1009_p3 }
  0x10   :  { %1019 = shalt.err (!%p1016_p7)
}
  0x11   :  { %s1071_s22 = smov 128   ;;  %s1072_s23 = smov 8  }
  0x12   :  { %22 = dma.hbm_to_vmem [thread:$0]  %s1241_s0, 640, %s17_s13, [#allocation4], %s1071_s22, %s1071_s22, %s1072_s23  }
  0x13   :  { %s1073_s26 = smov [#allocation6]   ;;  %s1020_s30 = scalar_lea.hbm %s1242_s1, 12288 }
  0x14   :  { %s28_s27 = sshll.u32 %s1073_s26, 4  ;;  %p1021_p8 = scmp.ne.s32.totalorder %s1242_s1, %s1020_s30  ;;  %s29_s27 = int_to_ptr.vmem [resolvable:$true] %s28_s27 }
  0x15   :  { %p1024_p9 = scmp.lt.u32.totalorder %s1020_s30, %s1242_s1 }
  0x17   :  { %p1026_p10 = pnand %p1024_p9, %p1021_p8 }
  0x19   :  { %1029 = shalt.err (!%p1026_p10)
}
  0x1a   :  { %s1030_s8 = scalar_lea.vmem %s29_s27, 12288  ;;  %p1035_p12 = scmp.lt.s32.totalorder %s29_s27, %s29_s27 }
  0x1b   :  { %p1031_p11 = scmp.ne.s32.totalorder %s29_s27, %s1030_s8  ;;  %p1036_p13 = scmp.lt.s32.totalorder %s1030_s8, %s1030_s8 }
  0x1d   :  { %p1037_p0 = por %p1036_p13, %p1035_p12 }
  0x1f   :  { %p1038_p1 = pnand %p1037_p0, %p1031_p11 }
  0x21   :  { %1041 = shalt.err (!%p1038_p1)
}
  0x22   :  { %34 = dma.hbm_to_vmem [thread:$0]  %s1242_s1, 12288, %s29_s27, [#allocation7], %s1071_s22, %s1071_s22, %s1072_s23  }
  0x23   :  { %1064 = dma.done.wait [#allocation4], 640  }
  0x24   :  { %1065 = vsyncadd [#allocation4], 4294966656 }
  0x25   :  { %1066 = dma.done.wait [#allocation7], 12288  }
  0x26   :  { %1067 = vsyncadd [#allocation7], 4294955008  ;;  %v1074_v0 = vmov 0.0|0.0   ;;  %vm1075_vm0 = vmmov 0   ;;  %v1076_v1 = vmov 0.0   ;;  %v103_v2 = vld [vmem:[#allocation6 + $0x80] sm:$0xff] }
  0x27   :  { %910 = vmatprep.subr.bf16.mxu1 %v1074_v0  ;;  %816 = vmatprep.mubr.msk.f32.mxu1 %vm1075_vm0, %v1076_v1  ;;  %343 = vst [vmem:[#allocation2] sm:$0x1] %v1076_v1  ;;  %346 = vst [vmem:[#allocation2 + $0x23] sm:$0x1] %v1076_v1  ;;  %v104_v3 = vld [vmem:[#allocation6 + $0x88] sm:$0xff]  ;;  %v87_v4 = vld [vmem:[#allocation6] sm:$0xff] }
  0x28   :  { %619 = vst [vmem:[#allocation8] sm:$0x1] %v1076_v1  ;;  %620 = vst [vmem:[#allocation8 + $0x23] sm:$0x1] %v1076_v1  ;;  %v878_v5 = vpack.c.bf16 %v104_v3, %v103_v2  ;;  %v88_v6 = vld [vmem:[#allocation6 + $0x8] sm:$0xff]  ;;  %v119_v7 = vld [vmem:[#allocation6 + $0x100] sm:$0xff] }
  0x29   :  { %v120_v8 = vld [vmem:[#allocation6 + $0x108] sm:$0xff]  ;;  %v880_v9 = vpack.c.bf16 %v88_v6, %v87_v4  ;;  %v105_v11 = vld [vmem:[#allocation6 + $0x90] sm:$0xff]  ;;  %v106_v12 = vld [vmem:[#allocation6 + $0x98] sm:$0xff]  ;;  %vm57_vm1 = vcmask 1046528   ;;  %vm72_vm2 = vcmask 1045504  }
  0x2a   :  { %v911_v10 = vpack.c.bf16 %v120_v8, %v119_v7  ;;  %v89_v13 = vld [vmem:[#allocation6 + $0x10] sm:$0xff]  ;;  %879 = vmatprep.subr.bf16.mxu0 %v878_v5  ;;  %v882_v14 = vpack.c.bf16 %v106_v12, %v105_v11  ;;  %v90_v15 = vld [vmem:[#allocation6 + $0x18] sm:$0xff]  ;;  %v107_v20 = vld [vmem:[#allocation6 + $0xa0] sm:$0xff] }
  0x2b   :  { %v121_v16 = vld [vmem:[#allocation6 + $0x110] sm:$0xff]  ;;  %v122_v17 = vld [vmem:[#allocation6 + $0x118] sm:$0xff]  ;;  %881 = vmatpush3.bf16.msra.mxu0 %v880_v9  ;;  %v884_v18 = vpack.c.bf16 %v90_v15, %v89_v13  ;;  %v108_v21 = vld [vmem:[#allocation6 + $0xa8] sm:$0xff] }
  0x2c   :  { %912 = vmatpush3.bf16.msra.mxu1 %v911_v10  ;;  %v914_v19 = vpack.c.bf16 %v122_v17, %v121_v16  ;;  %v91_v22 = vld [vmem:[#allocation6 + $0x20] sm:$0xff]  ;;  %883 = vmatprep.subr.bf16.mxu0 %v882_v14  ;;  %v886_v23 = vpack.c.bf16 %v108_v21, %v107_v20  ;;  %v92_v24 = vld [vmem:[#allocation6 + $0x28] sm:$0xff]  ;;  %v109_v27 = vld [vmem:[#allocation6 + $0xb0] sm:$0xff] }
  0x2d   :  { %913 = vmatprep.subr.bf16.mxu1 %v1074_v0  ;;  %v123_v25 = vld [vmem:[#allocation6 + $0x120] sm:$0xff]  ;;  %v124_v26 = vld [vmem:[#allocation6 + $0x128] sm:$0xff]  ;;  %v110_v28 = vld [vmem:[#allocation6 + $0xb8] sm:$0xff]  ;;  %v888_v29 = vpack.c.bf16 %v92_v24, %v91_v22 }
  0x2e   :  { %v917_v30 = vpack.c.bf16 %v124_v26, %v123_v25  ;;  %v93_v31 = vld [vmem:[#allocation6 + $0x30] sm:$0xff]  ;;  %v890_v32 = vpack.c.bf16 %v110_v28, %v109_v27  ;;  %v94_v33 = vld [vmem:[#allocation6 + $0x38] sm:$0xff]  ;;  %v111_v36 = vld [vmem:[#allocation6 + $0xc0] sm:$0xff] }
  0x2f   :  { %885 = vmatpush3.bf16.msra.mxu0 %v884_v18  ;;  %v125_v34 = vld [vmem:[#allocation6 + $0x130] sm:$0xff]  ;;  %v126_v35 = vld [vmem:[#allocation6 + $0x138] sm:$0xff]  ;;  %v112_v37 = vld [vmem:[#allocation6 + $0xc8] sm:$0xff]  ;;  %v892_v38 = vpack.c.bf16 %v94_v33, %v93_v31 }
  0x30   :  { %915 = vmatpush3.bf16.msra.mxu1 %v914_v19  ;;  %887 = vmatprep.subr.bf16.mxu0 %v886_v23  ;;  %v920_v39 = vpack.c.bf16 %v126_v35, %v125_v34  ;;  %v95_v40 = vld [vmem:[#allocation6 + $0x40] sm:$0xff]  ;;  %v894_v41 = vpack.c.bf16 %v112_v37, %v111_v36  ;;  %v96_v42 = vld [vmem:[#allocation6 + $0x48] sm:$0xff]  ;;  %v113_v45 = vld [vmem:[#allocation6 + $0xd0] sm:$0xff] }
  0x31   :  { %916 = vmatprep.subr.bf16.mxu1 %v1074_v0  ;;  %v127_v43 = vld [vmem:[#allocation6 + $0x140] sm:$0xff]  ;;  %v128_v44 = vld [vmem:[#allocation6 + $0x148] sm:$0xff]  ;;  %v114_v46 = vld [vmem:[#allocation6 + $0xd8] sm:$0xff]  ;;  %v896_v49 = vpack.c.bf16 %v96_v42, %v95_v40 }
  0x32   :  { %v1138_v47 = vld [vmem:[#allocation3] sm:$0xff]  ;;  %v1140_v48 = vld [vmem:[#allocation3 + $0x8] sm:$0xff]  ;;  %v923_v50 = vpack.c.bf16 %v128_v44, %v127_v43  ;;  %v97_v51 = vld [vmem:[#allocation6 + $0x50] sm:$0xff]  ;;  %v898_v54 = vpack.c.bf16 %v114_v46, %v113_v45 }
  0x33   :  { %889 = vmatpush3.bf16.msra.mxu0 %v888_v29  ;;  %v58_v52 = vrot.slane %v1138_v47, 1  ;;  %v59_v53 = vrot.slane %v1140_v48, 1  ;;  %v98_v55 = vld [vmem:[#allocation6 + $0x58] sm:$0xff]  ;;  %v129_v56 = vld [vmem:[#allocation6 + $0x150] sm:$0xff]  ;;  %v115_v58 = vld [vmem:[#allocation6 + $0xe0] sm:$0xff]  ;;  %v73_v20 = vrot.slane %v1138_v47, 2 }
  0x34   :  { %918 = vmatpush3.bf16.msra.mxu1 %v917_v30  ;;  %891 = vmatprep.subr.bf16.mxu0 %v890_v32  ;;  %v130_v57 = vld [vmem:[#allocation6 + $0x158] sm:$0xff]  ;;  %v116_v59 = vld [vmem:[#allocation6 + $0xe8] sm:$0xff]  ;;  %v900_v61 = vpack.c.bf16 %v98_v55, %v97_v51  ;;  %v99_v63 = vld [vmem:[#allocation6 + $0x60] sm:$0xff]  ;;  %v74_v21 = vrot.slane %v1140_v48, 2 }
  0x35   :  { %919 = vmatprep.subr.bf16.mxu1 %v1074_v0  ;;  %v1146_v60 = vsel %vm57_vm1, %v58_v52, %v59_v53  ;;  %v926_v62 = vpack.c.bf16 %v130_v57, %v129_v56  ;;  %v902_v2 = vpack.c.bf16 %v116_v59, %v115_v58  ;;  %v100_v3 = vld [vmem:[#allocation6 + $0x68] sm:$0xff]  ;;  %v131_v4 = vld [vmem:[#allocation6 + $0x160] sm:$0xff]  ;;  %v117_v6 = vld [vmem:[#allocation6 + $0xf0] sm:$0xff] }
  0x36   :  { %199 = vmatprep.mubr.f32.mxu0 %v1146_v60  ;;  %v132_v5 = vld [vmem:[#allocation6 + $0x168] sm:$0xff]  ;;  %v118_v7 = vld [vmem:[#allocation6 + $0xf8] sm:$0xff]  ;;  %v904_v8 = vpack.c.bf16 %v100_v3, %v99_v63  ;;  %v101_v10 = vld [vmem:[#allocation6 + $0x70] sm:$0xff]  ;;  %v75_v31 = vsel %vm72_vm2, %v73_v20, %v74_v21 }
  0x37   :  { %893 = vmatpush3.bf16.msra.mxu0 %v892_v38  ;;  %v929_v9 = vpack.c.bf16 %v132_v5, %v131_v4  ;;  %v906_v11 = vpack.c.bf16 %v118_v7, %v117_v6  ;;  %v102_v12 = vld [vmem:[#allocation6 + $0x78] sm:$0xff]  ;;  %v133_v13 = vld [vmem:[#allocation6 + $0x170] sm:$0xff]  ;;  %v1151_v15 = vld [vmem:[#allocation3 + $0x10] sm:$0xff] }
  0x38   :  { %921 = vmatpush3.bf16.msra.mxu1 %v920_v39  ;;  %895 = vmatprep.subr.bf16.mxu0 %v894_v41  ;;  %v134_v14 = vld [vmem:[#allocation6 + $0x178] sm:$0xff]  ;;  %v379_v16 = vld [vmem:[#allocation6 + $0x200] sm:$0xff]  ;;  %v380_v17 = vld [vmem:[#allocation6 + $0x208] sm:$0xff]  ;;  %v908_v18 = vpack.c.bf16 %v102_v12, %v101_v10  ;;  %v61_v22 = vrot.slane %v1151_v15, 1  ;;  %v76_v32 = vrot.slane %v1151_v15, 2 }
  0x39   :  { %922 = vmatprep.subr.bf16.mxu1 %v1074_v0  ;;  %v932_v19 = vpack.c.bf16 %v134_v14, %v133_v13  ;;  %v50_v23 = vld [vmem:[#allocation3 + $0x18] sm:$0xff]  ;;  %v934_v24 = vpack.c.bf16 %v380_v17, %v379_v16  ;;  %v363_v25 = vld [vmem:[#allocation6 + $0x180] sm:$0xff]  ;;  %v364_v26 = vld [vmem:[#allocation6 + $0x188] sm:$0xff] }
  0x3a   :  { %v395_v27 = vld [vmem:[#allocation6 + $0x280] sm:$0xff]  ;;  %v396_v28 = vld [vmem:[#allocation6 + $0x288] sm:$0xff]  ;;  %v381_v29 = vld [vmem:[#allocation6 + $0x210] sm:$0xff]  ;;  %v1160_v33 = vsel %vm57_vm1, %v59_v53, %v61_v22  ;;  %v63_v34 = vrot.slane %v50_v23, 1  ;;  %v936_v36 = vpack.c.bf16 %v364_v26, %v363_v25  ;;  %v77_v45 = vsel %vm72_vm2, %v74_v21, %v76_v32 }
  0x3b   :  { %897 = vmatpush3.bf16.msra.mxu0 %v896_v49  ;;  %v382_v30 = vld [vmem:[#allocation6 + $0x218] sm:$0xff]  ;;  %v967_v37 = vpack.c.bf16 %v396_v28, %v395_v27  ;;  %v365_v38 = vld [vmem:[#allocation6 + $0x190] sm:$0xff]  ;;  %v383_v43 = vld [vmem:[#allocation6 + $0x220] sm:$0xff]  ;;  %v78_v46 = vrot.slane %v50_v23, 2 }
  0x3c   :  { %924 = vmatpush3.bf16.msra.mxu1 %v923_v50  ;;  %899 = vmatprep.subr.bf16.mxu0 %v898_v54  ;;  %v51_v35 = vld [vmem:[#allocation3 + $0x20] sm:$0xf]  ;;  %v938_v39 = vpack.c.bf16 %v382_v30, %v381_v29  ;;  %v397_v41 = vld [vmem:[#allocation6 + $0x290] sm:$0xff]  ;;  %v384_v44 = vld [vmem:[#allocation6 + $0x228] sm:$0xff]  ;;  %v1169_v49 = vsel %vm57_vm1, %v61_v22, %v63_v34 }
  0x3d   :  { %925 = vmatprep.subr.bf16.mxu1 %v1074_v0  ;;  %v366_v40 = vld [vmem:[#allocation6 + $0x198] sm:$0xff]  ;;  %v1171_v50 = vrot.slane %v51_v35, 1  ;;  %v942_v52 = vpack.c.bf16 %v384_v44, %v383_v43  ;;  %v367_v53 = vld [vmem:[#allocation6 + $0x1a0] sm:$0xff]  ;;  %v368_v54 = vld [vmem:[#allocation6 + $0x1a8] sm:$0xff]  ;;  %v79_v55 = vsel %vm72_vm2, %v76_v32, %v78_v46  ;;  %v80_v56 = vrot.slane %v51_v35, 2 }
  0x3e   :  { %v398_v42 = vld [vmem:[#allocation6 + $0x298] sm:$0xff]  ;;  %v940_v51 = vpack.c.bf16 %v366_v40, %v365_v38  ;;  %v944_v58 = vpack.c.bf16 %v368_v54, %v367_v53  ;;  %v385_v59 = vld [vmem:[#allocation6 + $0x230] sm:$0xff]  ;;  %v399_v63 = vld [vmem:[#allocation6 + $0x2a0] sm:$0xff] }
  0x3f   :  { %901 = vmatpush3.bf16.msra.mxu0 %v900_v61  ;;  %v1181_v57 = vsel %vm57_vm1, %v63_v34, %v1171_v50  ;;  %v386_v61 = vld [vmem:[#allocation6 + $0x238] sm:$0xff]  ;;  %v369_v3 = vld [vmem:[#allocation6 + $0x1b0] sm:$0xff]  ;;  %v387_v7 = vld [vmem:[#allocation6 + $0x240] sm:$0xff] }
  0x40   :  { %927 = vmatpush3.bf16.msra.mxu1 %v926_v62  ;;  %903 = vmatprep.subr.bf16.mxu0 %v902_v2  ;;  %v946_v62 = vpack.c.bf16 %v386_v61, %v385_v59  ;;  %v400_v2 = vld [vmem:[#allocation6 + $0x2a8] sm:$0xff]  ;;  %v370_v5 = vld [vmem:[#allocation6 + $0x1b8] sm:$0xff]  ;;  %v401_v10 = vld [vmem:[#allocation6 + $0x2b0] sm:$0xff] }
  0x41   :  { %928 = vmatprep.subr.bf16.mxu1 %v1074_v0  ;;  %v973_v4 = vpack.c.bf16 %v400_v2, %v399_v63  ;;  %v948_v6 = vpack.c.bf16 %v370_v5, %v369_v3  ;;  %v371_v12 = vld [vmem:[#allocation6 + $0x1c0] sm:$0xff]  ;;  %v372_v13 = vld [vmem:[#allocation6 + $0x1c8] sm:$0xff]  ;;  %v389_v16 = vld [vmem:[#allocation6 + $0x250] sm:$0xff] }
  0x42   :  { %v390_v17 = vld [vmem:[#allocation6 + $0x258] sm:$0xff]  ;;  %v404_v20 = vld [vmem:[#allocation6 + $0x2c8] sm:$0xff]  ;;  %v373_v21 = vld [vmem:[#allocation6 + $0x1d0] sm:$0xff] }
  0x43   :  { %905 = vmatpush3.bf16.msra.mxu0 %v904_v8  ;;  %v388_v8 = vld [vmem:[#allocation6 + $0x248] sm:$0xff]  ;;  %v391_v25 = vld [vmem:[#allocation6 + $0x260] sm:$0xff]  ;;  %v405_v28 = vld [vmem:[#allocation6 + $0x2d0] sm:$0xff] }
  0x44   :  { %930 = vmatpush3.bf16.msra.mxu1 %v929_v9  ;;  %907 = vmatprep.subr.bf16.mxu0 %v906_v11  ;;  %v950_v9 = vpack.c.bf16 %v388_v8, %v387_v7  ;;  %v402_v11 = vld [vmem:[#allocation6 + $0x2b8] sm:$0xff]  ;;  %v392_v26 = vld [vmem:[#allocation6 + $0x268] sm:$0xff]  ;;  %v375_v30 = vld [vmem:[#allocation6 + $0x1e0] sm:$0xff] }
  0x45   :  { %931 = vmatprep.subr.bf16.mxu1 %v1074_v0  ;;  %v976_v14 = vpack.c.bf16 %v402_v11, %v401_v10  ;;  %v958_v27 = vpack.c.bf16 %v392_v26, %v391_v25  ;;  %v406_v29 = vld [vmem:[#allocation6 + $0x2d8] sm:$0xff]  ;;  %v376_v32 = vld [vmem:[#allocation6 + $0x1e8] sm:$0xff]  ;;  %v407_v38 = vld [vmem:[#allocation6 + $0x2e0] sm:$0xff] }
  0x46   :  { %v960_v34 = vpack.c.bf16 %v376_v32, %v375_v30  ;;  %v377_v40 = vld [vmem:[#allocation6 + $0x1f0] sm:$0xff] }
  0x47   :  { %909 = vmatpush3.bf16.msra.mxu0 %v908_v18  ;;  %v954_v18 = vpack.c.bf16 %v390_v17, %v389_v16  ;;  %v409_v44 = vld [vmem:[#allocation6 + $0x2f0] sm:$0xff] }
  0x48   :  { %933 = vmatpush3.bf16.msra.mxu1 %v932_v19  ;;  %935 = vmatprep.subr.bf16.mxu0 %v934_v24  ;;  %v403_v19 = vld [vmem:[#allocation6 + $0x2c0] sm:$0xff]  ;;  %v645_v59 = vld [vmem:[%s1243_s2 + $0x1] ss:$0 sm:$0xff] }
  0x49   :  { %966 = vmatprep.subr.bf16.mxu1 %v1074_v0  ;;  %v979_v22 = vpack.c.bf16 %v404_v20, %v403_v19 }
  0x4a   :  { %200 = vmatmul.mubr.f32.vlgmr.msra.gmra.mrb[0].mxu0 %v1138_v47  ;;  %v970_v47 = vpack.c.bf16 %v398_v42, %v397_v41  ;;  %v378_v42 = vld [vmem:[#allocation6 + $0x1f8] sm:$0xff] }
  0x4b   :  { %817 = vmatmul.mubr.f32.vlgmr.msra.gmra.mrb[0].mxu1 %v75_v31  ;;  %204 = vmatprep.mubr.f32.mxu0 %v1160_v33  ;;  %v982_v31 = vpack.c.bf16 %v406_v29, %v405_v28  ;;  %v964_v43 = vpack.c.bf16 %v378_v42, %v377_v40 }
  0x4c   :  { %819 = vmatprep.mubr.msk.f32.mxu1 %vm1075_vm0, %v1076_v1  ;;  %937 = vmatpush3.bf16.msra.mxu0 %v936_v36  ;;  %v394_v36 = vld [vmem:[#allocation6 + $0x278] sm:$0xff] }
  0x4d   :  { %968 = vmatpush3.bf16.msra.mxu1 %v967_v37  ;;  %939 = vmatprep.subr.bf16.mxu0 %v938_v39  ;;  %v408_v39 = vld [vmem:[#allocation6 + $0x2e8] sm:$0xff] }
  0x4e   :  { %969 = vmatprep.subr.bf16.mxu1 %v1074_v0  ;;  %205 = vmatmul.mubr.f32.gmra.mrb[2].mxu0 %v1140_v48  ;;  %v81_v48 = vsel %vm72_vm2, %v78_v46, %v80_v56  ;;  %v985_v41 = vpack.c.bf16 %v408_v39, %v407_v38 }
  0x4f   :  { %820 = vmatmul.mubr.f32.gmra.mrb[2].mxu1 %v77_v45  ;;  %209 = vmatprep.mubr.f32.mxu0 %v1169_v49  ;;  %v410_v45 = vld [vmem:[#allocation6 + $0x2f8] sm:$0xff] }
  0x50   :  { %822 = vmatprep.mubr.msk.f32.mxu1 %vm1075_vm0, %v1076_v1  ;;  %941 = vmatpush3.bf16.msra.mxu0 %v940_v51  ;;  %v988_v46 = vpack.c.bf16 %v410_v45, %v409_v44 }
  0x51   :  { %971 = vmatpush3.bf16.msra.mxu1 %v970_v47  ;;  %943 = vmatprep.subr.bf16.mxu0 %v942_v52 }
  0x52   :  { %972 = vmatprep.subr.bf16.mxu1 %v1074_v0  ;;  %210 = vmatmul.mubr.f32.gmra.mrb[4].mxu0 %v1151_v15  ;;  %v952_v15 = vpack.c.bf16 %v372_v13, %v371_v12 }
  0x53   :  { %823 = vmatmul.mubr.f32.gmra.mrb[4].mxu1 %v79_v55  ;;  %214 = vmatprep.mubr.f32.mxu0 %v1181_v57  ;;  %v644_v55 = vld [vmem:[%s1243_s2] ss:$0 sm:$0xff] }
  0x54   :  { %825 = vmatprep.mubr.msk.f32.mxu1 %vm1075_vm0, %v1076_v1  ;;  %945 = vmatpush3.bf16.msra.mxu0 %v944_v58 }
  0x55   :  { %947 = vmatprep.subr.bf16.mxu0 %v946_v62  ;;  %974 = vmatpush3.bf16.msra.mxu1 %v973_v4 }
  0x56   :  { %215 = vmatmul.mubr.f32.gmra.mrb[6].mxu0 %v50_v23  ;;  %975 = vmatprep.subr.bf16.mxu1 %v1074_v0  ;;  %v374_v23 = vld [vmem:[#allocation6 + $0x1d8] sm:$0xff] }
  0x57   :  { %826 = vmatmul.mubr.f32.gmra.mrb[6].mxu1 %v81_v48  ;;  %219 = vmatprep.mubr.f32.mxu0 %v1171_v50  ;;  %v956_v24 = vpack.c.bf16 %v374_v23, %v373_v21 }
  0x58   :  { %828 = vmatprep.mubr.msk.f32.mxu1 %vm1075_vm0, %v1076_v1  ;;  %949 = vmatpush3.bf16.msra.mxu0 %v948_v6 }
  0x59   :  { %951 = vmatprep.subr.bf16.mxu0 %v950_v9  ;;  %977 = vmatpush3.bf16.msra.mxu1 %v976_v14 }
  0x5a   :  { %220 = vmatmul.mubr.f32.gmra.mrb[8].mxu0 %v51_v35  ;;  %978 = vmatprep.subr.bf16.mxu1 %v1074_v0  ;;  %v393_v35 = vld [vmem:[#allocation6 + $0x270] sm:$0xff] }
  0x5b   :  { %829 = vmatmul.mubr.f32.gmra.mrb[8].mxu1 %v80_v56  ;;  %v962_v37 = vpack.c.bf16 %v394_v36, %v393_v35 }
  0x5c   :  { %863 = vmatprep.mubr.msk.f32.mxu1 %vm1075_vm0, %v1076_v1  ;;  %953 = vmatpush3.bf16.msra.mxu0 %v952_v15 }
  0x5d   :  { %955 = vmatprep.subr.bf16.mxu0 %v954_v18  ;;  %980 = vmatpush3.bf16.msra.mxu1 %v979_v22 }
  0x5e   :  { %981 = vmatprep.subr.bf16.mxu1 %v1074_v0 }
  0x60   :  { %957 = vmatpush3.bf16.msra.mxu0 %v956_v24 }
  0x61   :  { %959 = vmatprep.subr.bf16.mxu0 %v958_v27  ;;  %983 = vmatpush3.bf16.msra.mxu1 %v982_v31 }
  0x62   :  { %984 = vmatprep.subr.bf16.mxu1 %v1074_v0 }
  0x64   :  { %961 = vmatpush3.bf16.msra.mxu0 %v960_v34 }
  0x65   :  { %963 = vmatprep.subr.bf16.mxu0 %v962_v37  ;;  %986 = vmatpush3.bf16.msra.mxu1 %v985_v41 }
  0x66   :  { %987 = vmatprep.subr.bf16.mxu1 %v1074_v0 }
  0x68   :  { %965 = vmatpush3.bf16.msra.mxu0 %v964_v43 }
  0x69   :  { %989 = vmatpush3.bf16.msra.mxu1 %v988_v46 }
 0x11d   :  { %v680_v51 = vpop.f32.mrb[0].mxu0 }
 0x11e   :  { %v291_v47 = vpop.f32.mrb[0].mxu1  ;;  %v681_v52 = vpop.f32.mrb[1].mxu0 }
 0x11f   :  { %v818_v53 = vpop.f32.mrb[1].mxu1  ;;  %v682_v54 = vadd.f32 %v681_v52, %v680_v51 }
 0x121   :  { %v292_v56 = vadd.f32 %v682_v54, %v291_v47  ;;  %v683_v58 = vpop.f32.mrb[2].mxu0  ;;  %v646_v54 = vld [vmem:[%s1243_s2 + $0x2] ss:$0 sm:$0xff] }
 0x122   :  { %v296_v48 = vpop.f32.mrb[2].mxu1  ;;  %v684_v61 = vpop.f32.mrb[3].mxu0 }
 0x123   :  { %v821_v0 = vpop.f32.mrb[3].mxu1  ;;  %v319_v62 = vmul.f32 %v644_v55, %v292_v56  ;;  %v685_v63 = vadd.f32 %v684_v61, %v683_v58  ;;  %v647_v61 = vld [vmem:[%s1243_s2 + $0x3] ss:$0 sm:$0xff]  ;;  %s1077_s2 = smov [#allocation8]  }
 0x124   :  { %s631_s17 = sshll.u32 %s1077_s2, 4  ;;  %s632_s17 = int_to_ptr.vmem [resolvable:$true] %s631_s17 }
 0x125   :  { %v328_v2 = vadd.f32 %v645_v59, %v319_v62  ;;  %v297_v3 = vadd.f32 %v685_v63, %v296_v48  ;;  %v686_v4 = vpop.f32.mrb[4].mxu0  ;;  %s1042_s18 = scalar_lea.vmem %s632_s17, 640  ;;  %p1047_p3 = scmp.lt.s32.totalorder %s632_s17, %s632_s17 }
 0x126   :  { %v301_v5 = vpop.f32.mrb[4].mxu1  ;;  %v687_v6 = vpop.f32.mrb[5].mxu0  ;;  %p1043_p2 = scmp.ne.s32.totalorder %s632_s17, %s1042_s18  ;;  %p1048_p4 = scmp.lt.s32.totalorder %s1042_s18, %s1042_s18 }
 0x127   :  { %v824_v7 = vpop.f32.mrb[5].mxu1  ;;  %v333_v8 = vmax.f32 %v328_v2, 0.0  ;;  %v320_v9 = vmul.f32 %v644_v55, %v297_v3  ;;  %v688_v10 = vadd.f32 %v687_v6, %v686_v4 }
 0x128   :  { %p1049_p5 = por %p1048_p4, %p1047_p3 }
 0x129   :  { %338 = vst [vmem:[#allocation2 + $0x1] sm:$0xff] %v333_v8  ;;  %v329_v11 = vadd.f32 %v645_v59, %v320_v9  ;;  %v302_v12 = vadd.f32 %v688_v10, %v301_v5  ;;  %v689_v13 = vpop.f32.mrb[6].mxu0  ;;  %475 = vmatprep.mubr.f32.mxu0 %v333_v8 }
 0x12a   :  { %v306_v14 = vpop.f32.mrb[6].mxu1  ;;  %v690_v15 = vpop.f32.mrb[7].mxu0  ;;  %p1050_p6 = pnand %p1049_p5, %p1043_p2 }
 0x12b   :  { %v827_v16 = vpop.f32.mrb[7].mxu1  ;;  %v334_v17 = vmax.f32 %v329_v11, 0.0  ;;  %v321_v18 = vmul.f32 %v644_v55, %v302_v12  ;;  %v691_v19 = vadd.f32 %v690_v15, %v689_v13 }
 0x12d   :  { %339 = vst [vmem:[#allocation2 + $0x9] sm:$0xff] %v334_v17  ;;  %v330_v20 = vadd.f32 %v645_v59, %v321_v18  ;;  %v307_v21 = vadd.f32 %v691_v19, %v306_v14  ;;  %v692_v22 = vpop.f32.mrb[8].mxu0 }
 0x12e   :  { %v311_v23 = vpop.f32.mrb[8].mxu1  ;;  %v693_v24 = vpop.f32.mrb[9].mxu0 }
 0x12f   :  { %v830_v25 = vpop.f32.mrb[9].mxu1  ;;  %v335_v26 = vmax.f32 %v330_v20, 0.0  ;;  %v322_v27 = vmul.f32 %v644_v55, %v307_v21  ;;  %v694_v28 = vadd.f32 %v693_v24, %v692_v22 }
 0x130   :  { %v347_v29 = vld [vmem:[#allocation2] sm:$0xff] }
 0x131   :  { %340 = vst [vmem:[#allocation2 + $0x11] sm:$0xff] %v335_v26  ;;  %v331_v30 = vadd.f32 %v645_v59, %v322_v27  ;;  %v312_v31 = vadd.f32 %v694_v28, %v311_v23  ;;  %476 = vmatmul.mubr.f32.vlgmr.msra.gmra.mrb[10].mxu0 %v347_v29 }
 0x132   :  { %344 = vst [vmem:[#allocation2 + $0x12] sm:$0x1] %v1076_v1  ;;  %345 = vst [vmem:[#allocation2 + $0x11] sm:$0x1] %v1076_v1  ;;  %480 = vmatprep.mubr.f32.mxu0 %v334_v17 }
 0x133   :  { %v336_v32 = vmax.f32 %v331_v30, 0.0  ;;  %v323_v34 = vmul.f32 %v644_v55, %v312_v31 }
 0x134   :  { %v357_v35 = vld [vmem:[#allocation2 + $0x2] sm:$0xff] }
 0x135   :  { %v348_v36 = vld [vmem:[#allocation2 + $0x8] sm:$0xff]  ;;  %341 = vst [vmem:[#allocation2 + $0x19] sm:$0xff] %v336_v32  ;;  %v332_v37 = vadd.f32 %v645_v59, %v323_v34  ;;  %864 = vmatmul.mubr.f32.vlgmr.msra.gmra.mrb[10].mxu1 %v357_v35 }
 0x136   :  { %481 = vmatmul.mubr.f32.gmra.mrb[12].mxu0 %v348_v36  ;;  %866 = vmatprep.mubr.msk.f32.mxu1 %vm1075_vm0, %v1076_v1 }
 0x137   :  { %v337_v38 = vmax.f32 %v332_v37, 0.0 }
 0x139   :  { %342 = vst [vmem:[#allocation2 + $0x21] sm:$0x3] %v337_v38  ;;  %v354_v39 = vld [vmem:[#allocation2 + $0x11] sm:$0xff] }
 0x13a   :  { %v358_v40 = vld [vmem:[#allocation2 + $0xa] sm:$0xff]  ;;  %485 = vmatprep.mubr.f32.mxu0 %v354_v39 }
 0x13b   :  { %v349_v41 = vld [vmem:[#allocation2 + $0x10] sm:$0xff]  ;;  %867 = vmatmul.mubr.f32.gmra.mrb[12].mxu1 %v358_v40 }
 0x13c   :  { %486 = vmatmul.mubr.f32.gmra.mrb[14].mxu0 %v349_v41  ;;  %869 = vmatprep.mubr.msk.f32.mxu1 %vm1075_vm0, %v1076_v1  ;;  %v359_v42 = vld [vmem:[#allocation2 + $0x12] sm:$0xff] }
 0x13d   :  { %490 = vmatprep.mubr.f32.mxu0 %v336_v32  ;;  %v350_v43 = vld [vmem:[#allocation2 + $0x18] sm:$0xff] }
 0x13f   :  { %870 = vmatmul.mubr.f32.gmra.mrb[14].mxu1 %v359_v42 }
 0x140   :  { %491 = vmatmul.mubr.f32.gmra.mrb[16].mxu0 %v350_v43  ;;  %872 = vmatprep.mubr.msk.f32.mxu1 %vm1075_vm0, %v1076_v1  ;;  %v356_v44 = vld [vmem:[#allocation2 + $0x21] sm:$0x3] }
 0x141   :  { %v360_v45 = vld [vmem:[#allocation2 + $0x1a] sm:$0xff]  ;;  %495 = vmatprep.mubr.f32.mxu0 %v356_v44  ;;  %v361_v51 = vld [vmem:[#allocation2 + $0x22] sm:$0x3] }
 0x142   :  { %v351_v46 = vld [vmem:[#allocation2 + $0x20] sm:$0x3] }
 0x143   :  { %873 = vmatmul.mubr.f32.gmra.mrb[16].mxu1 %v360_v45 }
 0x144   :  { %496 = vmatmul.mubr.f32.gmra.mrb[18].mxu0 %v351_v46  ;;  %875 = vmatprep.mubr.msk.f32.mxu1 %vm1075_vm0, %v1076_v1 }
 0x147   :  { %876 = vmatmul.mubr.f32.gmra.mrb[18].mxu1 %v361_v51 }
 0x204   :  { %v748_v47 = vpop.f32.mrb[10].mxu0 }
 0x205   :  { %v749_v52 = vpop.f32.mrb[11].mxu0 }
 0x206   :  { %v750_v53 = vadd.f32 %v749_v52, %v748_v47 }
 0x208   :  { %v567_v55 = vpop.f32.mrb[10].mxu1 }
 0x209   :  { %v751_v56 = vpop.f32.mrb[12].mxu0  ;;  %v568_v58 = vadd.f32 %v750_v53, %v567_v55  ;;  %v865_v48 = vpop.f32.mrb[11].mxu1 }
 0x20a   :  { %v752_v59 = vpop.f32.mrb[13].mxu0 }
 0x20b   :  { %v753_v0 = vadd.f32 %v752_v59, %v751_v56  ;;  %v595_v1 = vmul.f32 %v646_v54, %v568_v58 }
 0x20d   :  { %v604_v62 = vadd.f32 %v647_v61, %v595_v1 }
 0x20e   :  { %v572_v63 = vpop.f32.mrb[12].mxu1 }
 0x20f   :  { %v573_v2 = vadd.f32 %v753_v0, %v572_v63  ;;  %v754_v3 = vpop.f32.mrb[14].mxu0  ;;  %v868_v4 = vpop.f32.mrb[13].mxu1  ;;  %v609_v5 = vadd.f32 %v604_v62, %v1146_v60 }
 0x210   :  { %v755_v6 = vpop.f32.mrb[15].mxu0 }
 0x211   :  { %v596_v7 = vmul.f32 %v646_v54, %v573_v2  ;;  %v756_v8 = vadd.f32 %v755_v6, %v754_v3  ;;  %v614_v9 = vmax.f32 %v609_v5, 0.0 }
 0x212   :  { %v577_v10 = vpop.f32.mrb[14].mxu1 }
 0x213   :  { %v605_v11 = vadd.f32 %v647_v61, %v596_v7  ;;  %v578_v12 = vadd.f32 %v756_v8, %v577_v10  ;;  %v757_v13 = vpop.f32.mrb[16].mxu0  ;;  %v871_v14 = vpop.f32.mrb[15].mxu1  ;;  %621 = vst [vmem:[#allocation8 + $0x1] sm:$0xff] %v614_v9 }
 0x214   :  { %v758_v15 = vpop.f32.mrb[17].mxu0 }
 0x215   :  { %v610_v16 = vadd.f32 %v605_v11, %v1160_v33  ;;  %v597_v17 = vmul.f32 %v646_v54, %v578_v12  ;;  %v759_v18 = vadd.f32 %v758_v15, %v757_v13 }
 0x216   :  { %v582_v19 = vpop.f32.mrb[16].mxu1 }
 0x217   :  { %v615_v20 = vmax.f32 %v610_v16, 0.0  ;;  %v606_v21 = vadd.f32 %v647_v61, %v597_v17  ;;  %v583_v22 = vadd.f32 %v759_v18, %v582_v19  ;;  %v760_v60 = vpop.f32.mrb[18].mxu0  ;;  %v874_v23 = vpop.f32.mrb[17].mxu1 }
 0x218   :  { %v761_v24 = vpop.f32.mrb[19].mxu0 }
 0x219   :  { %622 = vst [vmem:[#allocation8 + $0x9] sm:$0xff] %v615_v20  ;;  %v611_v25 = vadd.f32 %v606_v21, %v1169_v49  ;;  %v598_v26 = vmul.f32 %v646_v54, %v583_v22  ;;  %v762_v27 = vadd.f32 %v761_v24, %v760_v60 }
 0x21a   :  { %v587_v28 = vpop.f32.mrb[18].mxu1 }
 0x21b   :  { %v616_v29 = vmax.f32 %v611_v25, 0.0  ;;  %v607_v30 = vadd.f32 %v647_v61, %v598_v26  ;;  %v588_v31 = vadd.f32 %v762_v27, %v587_v28  ;;  %v877_v32 = vpop.f32.mrb[19].mxu1 }
 0x21d   :  { %623 = vst [vmem:[#allocation8 + $0x11] sm:$0xff] %v616_v29  ;;  %v612_v33 = vadd.f32 %v607_v30, %v1181_v57  ;;  %v599_v34 = vmul.f32 %v646_v54, %v588_v31 }
 0x21f   :  { %v617_v35 = vmax.f32 %v612_v33, 0.0  ;;  %v608_v36 = vadd.f32 %v647_v61, %v599_v34 }
 0x221   :  { %624 = vst [vmem:[#allocation8 + $0x19] sm:$0xff] %v617_v35  ;;  %v613_v37 = vadd.f32 %v608_v36, %v1171_v50 }
 0x223   :  { %v618_v38 = vmax.f32 %v613_v37, 0.0 }
 0x225   :  { %625 = vst [vmem:[#allocation8 + $0x21] sm:$0x3] %v618_v38 }
 0x226   :  { %1053 = shalt.err (!%p1050_p6)
}
 0x227   :  { %s1054_s21 = scalar_lea.hbm %s1244_s3, 640 }
 0x228   :  { %p1055_p7 = scmp.ne.s32.totalorder %s1244_s3, %s1054_s21  ;;  %p1058_p8 = scmp.lt.u32.totalorder %s1054_s21, %s1244_s3 }
 0x22a   :  { %p1060_p9 = pnand %p1058_p8, %p1055_p7 }
 0x22c   :  { %1063 = shalt.err (!%p1060_p9)
}
 0x22d   :  { %637 = dma.vmem_to_hbm [thread:$0]  %s632_s17, 640, %s1244_s3, [#allocation5], %s1071_s22, %s1071_s22, %s1072_s23  }
 0x22e   :  { %1068 = dma.done.wait [#allocation5], 640  }
 0x22f   :  { %1069 = vsyncadd [#allocation5], 4294966656 }
 0x230   :  { %641 = vsyncpa [#allocation4], 1 }
 0x231   :  { %642 = vsyncpa [#allocation7], 1 }
 0x232   :  { %643 = vsyncpa [#allocation5], 1 }

</bundles_post_ra>
